<compile_context>
chip_gen: v6e
topology: v6e:2x2x1
jax: 0.10.0
libtpu: 0.0.40
codegen_flags: <defaults>
</compile_context>

<pallas_src>
import math
from functools import partial

import jax
import jax.numpy as jnp
from jax import lax
from jax.experimental import pallas as pl
from jax.experimental.pallas import tpu as pltpu


def _mha_kernel(q_ref, k_ref, v_ref,
                wq_ref, wk_ref, wv_ref,
                bq_ref, bk_ref, bv_ref,
                wo_ref, bo_ref,
                out_ref, attn_ref,
                acc_out_ref, acc_attn_ref,
                *, num_heads: int, head_dim: int, compute_dtype):
    # grid = (batch, query_tile, head); head is the innermost reduction axis.
    h = pl.program_id(2)

    @pl.when(h == 0)
    def _():
        acc_out_ref[...] = jnp.zeros_like(acc_out_ref)
        acc_attn_ref[...] = jnp.zeros_like(acc_attn_ref)

    cd = compute_dtype
    scale = 1.0 / math.sqrt(head_dim)

    q = q_ref[0]       # (TL, E)  compute dtype
    k = k_ref[0]       # (S,  E)
    v = v_ref[0]       # (S,  E)
    wq = wq_ref[0]     # (E, hd)  per-head weight slab selected via BlockSpec
    wk = wk_ref[0]     # (E, hd)
    wv = wv_ref[0]     # (E, hd)
    wo_h = wo_ref[0]   # (hd, E)  per-head rows of the output projection

    # Per-head input projections (MXU matmuls, f32 accumulation, f32 bias add).
    qh = jnp.dot(q, wq, preferred_element_type=jnp.float32) + bq_ref[0]   # (TL, hd)
    kh = jnp.dot(k, wk, preferred_element_type=jnp.float32) + bk_ref[0]   # (S,  hd)
    vh = jnp.dot(v, wv, preferred_element_type=jnp.float32) + bv_ref[0]   # (S,  hd)
    qh = qh * scale

    # scores = Q_h @ K_h^T — transpose absorbed into the contraction dims.
    scores = lax.dot_general(
        qh.astype(cd), kh.astype(cd),
        dimension_numbers=(((1,), (1,)), ((), ())),
        preferred_element_type=jnp.float32)                               # (TL, S)

    # Numerically stable softmax along keys; reciprocal on the EUP instead of divide.
    m = jnp.max(scores, axis=-1, keepdims=True)
    e = jnp.exp(scores - m)
    denom = jnp.sum(e, axis=-1, keepdims=True)
    p = e * pl.reciprocal(denom, approx=True)                             # (TL, S) f32

    ctx = jnp.dot(p.astype(cd), vh.astype(cd),
                  preferred_element_type=jnp.float32)                     # (TL, hd)

    # Per-head slice of the output projection, accumulated over heads in VMEM scratch.
    acc_out_ref[...] += jnp.dot(ctx.astype(cd), wo_h,
                                preferred_element_type=jnp.float32)       # (TL, E)
    acc_attn_ref[...] += p

    @pl.when(h == num_heads - 1)
    def _():
        out_ref[0] = (acc_out_ref[...] + bo_ref[...]).astype(out_ref.dtype)
        attn_ref[0] = (acc_attn_ref[...] * (1.0 / num_heads)).astype(attn_ref.dtype)


def _choose_q_tile(L: int, target: int) -> int:
    """Largest multiple-of-8 divisor of L that is <= target, else L itself."""
    if L <= target:
        return L
    t = (target // 8) * 8
    while t >= 8:
        if L % t == 0:
            return t
        t -= 8
    return L


def mha_forward(q, k, v, params, *, num_heads: int,
                compute_dtype=jnp.bfloat16, q_tile: int = 256):
    """Pallas implementation of MHANet.forward -> (attn_output, attn_weights)."""
    B, L, E = q.shape
    S = k.shape[1]
    assert E % num_heads == 0
    H = num_heads
    hd = E // H
    out_dtype = q.dtype
    cd = compute_dtype

    # Head-major weight layouts so per-head selection is a BlockSpec (DMA) view.
    wq = params["wq"].reshape(E, H, hd).transpose(1, 0, 2).astype(cd)   # (H, E, hd)
    wk = params["wk"].reshape(E, H, hd).transpose(1, 0, 2).astype(cd)   # (H, E, hd)
    wv = params["wv"].reshape(E, H, hd).transpose(1, 0, 2).astype(cd)   # (H, E, hd)
    wo = params["wo"].reshape(H, hd, E).astype(cd)                      # (H, hd, E)
    bq = params["bq"].reshape(H, 1, hd).astype(jnp.float32)             # (H, 1, hd)
    bk = params["bk"].reshape(H, 1, hd).astype(jnp.float32)
    bv = params["bv"].reshape(H, 1, hd).astype(jnp.float32)
    bo = params["bo"].astype(jnp.float32)                               # (1, E)

    # Cast activations once in the wrapper: halves HBM/VMEM traffic for q/k/v.
    q_c = q.astype(cd)
    k_c = k.astype(cd)
    v_c = v.astype(cd)

    tl = _choose_q_tile(L, q_tile)
    n_l = L // tl
    grid = (B, n_l, H)

    kernel = partial(_mha_kernel, num_heads=H, head_dim=hd, compute_dtype=cd)

    out, attn = pl.pallas_call(
        kernel,
        out_shape=(
            jax.ShapeDtypeStruct((B, L, E), out_dtype),
            jax.ShapeDtypeStruct((B, L, S), jnp.float32),
        ),
        grid=grid,
        in_specs=[
            pl.BlockSpec((1, tl, E), lambda b, l, h: (b, l, 0)),   # q  (per L-tile)
            pl.BlockSpec((1, S, E), lambda b, l, h: (b, 0, 0)),    # k  (resident per b)
            pl.BlockSpec((1, S, E), lambda b, l, h: (b, 0, 0)),    # v  (resident per b)
            pl.BlockSpec((1, E, hd), lambda b, l, h: (h, 0, 0)),   # wq per head
            pl.BlockSpec((1, E, hd), lambda b, l, h: (h, 0, 0)),   # wk per head
            pl.BlockSpec((1, E, hd), lambda b, l, h: (h, 0, 0)),   # wv per head
            pl.BlockSpec((1, 1, hd), lambda b, l, h: (h, 0, 0)),   # bq per head
            pl.BlockSpec((1, 1, hd), lambda b, l, h: (h, 0, 0)),   # bk per head
            pl.BlockSpec((1, 1, hd), lambda b, l, h: (h, 0, 0)),   # bv per head
            pl.BlockSpec((1, hd, E), lambda b, l, h: (h, 0, 0)),   # wo per head
            pl.BlockSpec((1, E), lambda b, l, h: (0, 0)),          # bo
        ],
        out_specs=(
            pl.BlockSpec((1, tl, E), lambda b, l, h: (b, l, 0)),   # out
            pl.BlockSpec((1, tl, S), lambda b, l, h: (b, l, 0)),   # attn weights
        ),
        scratch_shapes=[
            pltpu.VMEM((tl, E), jnp.float32),   # output-projection accumulator
            pltpu.VMEM((tl, S), jnp.float32),   # attention-weight accumulator
        ],
        compiler_params=pltpu.CompilerParams(
            dimension_semantics=("parallel", "parallel", "arbitrary")),
    )(q_c, k_c, v_c, wq, wk, wv, bq, bk, bv, wo, bo)
    return out, attn


def make_params(key, embed_dim):
    """Deterministic synthetic parameters matching nn.MultiheadAttention shapes."""
    E = embed_dim
    k1, k2, k3, k4 = jax.random.split(key, 4)
    in_proj_w = jax.random.normal(k1, (3 * E, E), jnp.float32) * (1.0 / math.sqrt(E))
    in_proj_b = jax.random.normal(k2, (3 * E,), jnp.float32) * 0.02
    out_w = jax.random.normal(k3, (E, E), jnp.float32) * (1.0 / math.sqrt(E))
    out_b = jax.random.normal(k4, (E,), jnp.float32) * 0.02
    # PyTorch computes x @ W^T + b; pre-transpose so kernels do x @ W.
    return {
        "wq": in_proj_w[0 * E:1 * E].T,
        "wk": in_proj_w[1 * E:2 * E].T,
        "wv": in_proj_w[2 * E:3 * E].T,
        "bq": in_proj_b[0 * E:1 * E].reshape(1, E),
        "bk": in_proj_b[1 * E:2 * E].reshape(1, E),
        "bv": in_proj_b[2 * E:3 * E].reshape(1, E),
        "wo": out_w.T,
        "bo": out_b.reshape(1, E),
    }


def mha_reference(q, k, v, params, *, num_heads: int):
    """Pure-JAX reference (mirrors torch.nn.MultiheadAttention math)."""
    B, L, E = q.shape
    S = k.shape[1]
    hd = E // num_heads
    qp = q @ params["wq"] + params["bq"]
    kp = k @ params["wk"] + params["bk"]
    vp = v @ params["wv"] + params["bv"]

    def split(x, T):
        return x.reshape(B, T, num_heads, hd).transpose(0, 2, 1, 3)

    qh, kh, vh = split(qp, L), split(kp, S), split(vp, S)
    scores = jnp.einsum("bhld,bhsd->bhls", qh, kh) / math.sqrt(hd)
    attn = jax.nn.softmax(scores, axis=-1)
    ctx = jnp.einsum("bhls,bhsd->bhld", attn, vh)
    ctx = ctx.transpose(0, 2, 1, 3).reshape(B, L, E)
    out = ctx @ params["wo"] + params["bo"]
    return out, attn.mean(axis=1)


if __name__ == "__main__":
    embed_dim, num_heads = 32, 4
    key = jax.random.PRNGKey(0)
    kq, kk, kv, kp, kq2 = jax.random.split(key, 5)
    params = make_params(kp, embed_dim)

    B, L, S = 2, 8, 8
    q = jax.random.normal(kq, (B, L, embed_dim), jnp.float32)
    k = jax.random.normal(kk, (B, S, embed_dim), jnp.float32)
    v = jax.random.normal(kv, (B, S, embed_dim), jnp.float32)
    ref_out, ref_attn = mha_reference(q, k, v, params, num_heads=num_heads)

    # 1) f32 compute path (tight check).
    out, attn = mha_forward(q, k, v, params, num_heads=num_heads,
                            compute_dtype=jnp.float32)
    out = jax.block_until_ready(out)
    attn = jax.block_until_ready(attn)
    assert out.shape == (B, L, embed_dim) and attn.shape == (B, L, S)
    assert float(jnp.max(jnp.abs(out - ref_out))) < 1e-2
    assert float(jnp.max(jnp.abs(attn - ref_attn))) < 1e-2

    # 2) bf16 compute path (recommended fast path; looser tolerance).
    out16, attn16 = mha_forward(q, k, v, params, num_heads=num_heads,
                                compute_dtype=jnp.bfloat16)
    out16 = jax.block_until_ready(out16)
    attn16 = jax.block_until_ready(attn16)
    assert float(jnp.max(jnp.abs(out16 - ref_out))) < 2e-1
    assert float(jnp.max(jnp.abs(attn16 - ref_attn))) < 6e-2

    # 3) query-dimension tiling path (L split into two 8-row tiles), f32.
    L2 = 16
    q2 = jax.random.normal(kq2, (B, L2, embed_dim), jnp.float32)
    out2, attn2 = mha_forward(q2, k, v, params, num_heads=num_heads,
                              compute_dtype=jnp.float32, q_tile=8)
    out2 = jax.block_until_ready(out2)
    attn2 = jax.block_until_ready(attn2)
    ref_out2, ref_attn2 = mha_reference(q2, k, v, params, num_heads=num_heads)
    assert float(jnp.max(jnp.abs(out2 - ref_out2))) < 1e-2
    assert float(jnp.max(jnp.abs(attn2 - ref_attn2))) < 1e-2

    print("KERNEL_OK")
</pallas_src>

<mosaic_0001>
module attributes {stable_mosaic.version = 11 : i64} {
  func.func @_mha_kernel(%arg0: i32, %arg1: i32, %arg2: i32, %arg3: memref<1x8x32xf32, #tpu.memory_space<vmem>>, %arg4: memref<1x8x32xf32, #tpu.memory_space<vmem>>, %arg5: memref<1x8x32xf32, #tpu.memory_space<vmem>>, %arg6: memref<1x32x8xf32, #tpu.memory_space<vmem>>, %arg7: memref<1x32x8xf32, #tpu.memory_space<vmem>>, %arg8: memref<1x32x8xf32, #tpu.memory_space<vmem>>, %arg9: memref<1x1x8xf32, #tpu.memory_space<vmem>>, %arg10: memref<1x1x8xf32, #tpu.memory_space<vmem>>, %arg11: memref<1x1x8xf32, #tpu.memory_space<vmem>>, %arg12: memref<1x8x32xf32, #tpu.memory_space<vmem>>, %arg13: memref<1x32xf32, #tpu.memory_space<vmem>>, %arg14: memref<1x8x32xf32, #tpu.memory_space<vmem>>, %arg15: memref<1x8x8xf32, #tpu.memory_space<vmem>>, %arg16: memref<8x32xf32, #tpu.memory_space<vmem>>, %arg17: memref<8x8xf32, #tpu.memory_space<vmem>>) attributes {dimension_semantics = [#tpu.dimension_semantics<parallel>, #tpu.dimension_semantics<parallel>, #tpu.dimension_semantics<arbitrary>], iteration_bounds = array<i64: 2, 1, 4>, scalar_prefetch = 0 : i64, scratch_operands = 2 : i64, tpu.core_type = #tpu.core_type<tc>, window_params = [{transform_indices = @transform_0, window_bounds = array<i64: 1, 8, 32>}, {transform_indices = @transform_1, window_bounds = array<i64: 1, 8, 32>}, {transform_indices = @transform_2, window_bounds = array<i64: 1, 8, 32>}, {transform_indices = @transform_3, window_bounds = array<i64: 1, 32, 8>}, {transform_indices = @transform_4, window_bounds = array<i64: 1, 32, 8>}, {transform_indices = @transform_5, window_bounds = array<i64: 1, 32, 8>}, {transform_indices = @transform_6, window_bounds = array<i64: 1, 1, 8>}, {transform_indices = @transform_7, window_bounds = array<i64: 1, 1, 8>}, {transform_indices = @transform_8, window_bounds = array<i64: 1, 1, 8>}, {transform_indices = @transform_9, window_bounds = array<i64: 1, 8, 32>}, {pipeline_mode = #tpu.pipeline_mode<synchronous>, transform_indices = @transform_10, window_bounds = array<i64: 1, 32>}, {transform_indices = @transform_11, window_bounds = array<i64: 1, 8, 32>}, {transform_indices = @transform_12, window_bounds = array<i64: 1, 8, 8>}]} {
    %c0_i32 = arith.constant 0 : i32
    %0 = arith.cmpi eq, %arg2, %c0_i32 : i32
    %1 = arith.extui %0 : i1 to i32
    %c0_i32_0 = arith.constant 0 : i32
    %2 = arith.cmpi ne, %1, %c0_i32_0 : i32
    scf.if %2 {
      %cst_47 = arith.constant 0.000000e+00 : f32
      %56 = vector.broadcast %cst_47 : f32 to vector<8x32xf32>
      %c0_48 = arith.constant 0 : index
      %c0_49 = arith.constant 0 : index
      %57 = vector.load %arg16[%c0_48, %c0_49] : memref<8x32xf32, #tpu.memory_space<vmem>>, vector<8x32xf32>
      tpu.vector_store %arg16[%c0_48, %c0_49], %56 {strides = array<i32>} : memref<8x32xf32, #tpu.memory_space<vmem>>, vector<8x32xf32>,
      %cst_50 = arith.constant 0.000000e+00 : f32
      %58 = vector.broadcast %cst_50 : f32 to vector<8x8xf32>
      %c0_51 = arith.constant 0 : index
      %c0_52 = arith.constant 0 : index
      %59 = vector.load %arg17[%c0_51, %c0_52] : memref<8x8xf32, #tpu.memory_space<vmem>>, vector<8x8xf32>
      tpu.vector_store %arg17[%c0_51, %c0_52], %58 {strides = array<i32>} : memref<8x8xf32, #tpu.memory_space<vmem>>, vector<8x8xf32>,
    } else {
    }
    %c0 = arith.constant 0 : index
    %c0_1 = arith.constant 0 : index
    %c0_2 = arith.constant 0 : index
    %3 = vector.load %arg3[%c0, %c0_1, %c0_2] : memref<1x8x32xf32, #tpu.memory_space<vmem>>, vector<1x8x32xf32>
    %4 = vector.shape_cast %3 : vector<1x8x32xf32> to vector<8x32xf32>
    %c0_3 = arith.constant 0 : index
    %c0_4 = arith.constant 0 : index
    %c0_5 = arith.constant 0 : index
    %5 = vector.load %arg4[%c0_3, %c0_4, %c0_5] : memref<1x8x32xf32, #tpu.memory_space<vmem>>, vector<1x8x32xf32>
    %6 = vector.shape_cast %5 : vector<1x8x32xf32> to vector<8x32xf32>
    %c0_6 = arith.constant 0 : index
    %c0_7 = arith.constant 0 : index
    %c0_8 = arith.constant 0 : index
    %7 = vector.load %arg5[%c0_6, %c0_7, %c0_8] : memref<1x8x32xf32, #tpu.memory_space<vmem>>, vector<1x8x32xf32>
    %8 = vector.shape_cast %7 : vector<1x8x32xf32> to vector<8x32xf32>
    %c0_9 = arith.constant 0 : index
    %c0_10 = arith.constant 0 : index
    %c0_11 = arith.constant 0 : index
    %9 = vector.load %arg6[%c0_9, %c0_10, %c0_11] : memref<1x32x8xf32, #tpu.memory_space<vmem>>, vector<1x32x8xf32>
    %10 = vector.shape_cast %9 : vector<1x32x8xf32> to vector<32x8xf32>
    %c0_12 = arith.constant 0 : index
    %c0_13 = arith.constant 0 : index
    %c0_14 = arith.constant 0 : index
    %11 = vector.load %arg7[%c0_12, %c0_13, %c0_14] : memref<1x32x8xf32, #tpu.memory_space<vmem>>, vector<1x32x8xf32>
    %12 = vector.shape_cast %11 : vector<1x32x8xf32> to vector<32x8xf32>
    %c0_15 = arith.constant 0 : index
    %c0_16 = arith.constant 0 : index
    %c0_17 = arith.constant 0 : index
    %13 = vector.load %arg8[%c0_15, %c0_16, %c0_17] : memref<1x32x8xf32, #tpu.memory_space<vmem>>, vector<1x32x8xf32>
    %14 = vector.shape_cast %13 : vector<1x32x8xf32> to vector<32x8xf32>
    %c0_18 = arith.constant 0 : index
    %c0_19 = arith.constant 0 : index
    %c0_20 = arith.constant 0 : index
    %15 = vector.load %arg12[%c0_18, %c0_19, %c0_20] : memref<1x8x32xf32, #tpu.memory_space<vmem>>, vector<1x8x32xf32>
    %16 = vector.shape_cast %15 : vector<1x8x32xf32> to vector<8x32xf32>
    %cst = arith.constant dense<0.000000e+00> : vector<8x8xf32>
    %17 = tpu.matmul %4, %10, %cst {dimension_numbers = #tpu.dot_dimension_numbers<[1], [0], [0], [1], [0, 0, 1, 1], [], []>} : vector<8x32xf32>, vector<32x8xf32>, vector<8x8xf32> -> vector<8x8xf32>
    %c0_21 = arith.constant 0 : index
    %c0_22 = arith.constant 0 : index
    %c0_23 = arith.constant 0 : index
    %18 = vector.load %arg9[%c0_21, %c0_22, %c0_23] : memref<1x1x8xf32, #tpu.memory_space<vmem>>, vector<1x1x8xf32>
    %19 = vector.shape_cast %18 : vector<1x1x8xf32> to vector<1x8xf32>
    %20 = vector.broadcast %19 : vector<1x8xf32> to vector<8x8xf32>
    %21 = arith.addf %17, %20 : vector<8x8xf32>
    %cst_24 = arith.constant dense<0.000000e+00> : vector<8x8xf32>
    %22 = tpu.matmul %6, %12, %cst_24 {dimension_numbers = #tpu.dot_dimension_numbers<[1], [0], [0], [1], [0, 0, 1, 1], [], []>} : vector<8x32xf32>, vector<32x8xf32>, vector<8x8xf32> -> vector<8x8xf32>
    %c0_25 = arith.constant 0 : index
    %c0_26 = arith.constant 0 : index
    %c0_27 = arith.constant 0 : index
    %23 = vector.load %arg10[%c0_25, %c0_26, %c0_27] : memref<1x1x8xf32, #tpu.memory_space<vmem>>, vector<1x1x8xf32>
    %24 = vector.shape_cast %23 : vector<1x1x8xf32> to vector<1x8xf32>
    %25 = vector.broadcast %24 : vector<1x8xf32> to vector<8x8xf32>
    %26 = arith.addf %22, %25 : vector<8x8xf32>
    %cst_28 = arith.constant dense<0.000000e+00> : vector<8x8xf32>
    %27 = tpu.matmul %8, %14, %cst_28 {dimension_numbers = #tpu.dot_dimension_numbers<[1], [0], [0], [1], [0, 0, 1, 1], [], []>} : vector<8x32xf32>, vector<32x8xf32>, vector<8x8xf32> -> vector<8x8xf32>
    %c0_29 = arith.constant 0 : index
    %c0_30 = arith.constant 0 : index
    %c0_31 = arith.constant 0 : index
    %28 = vector.load %arg11[%c0_29, %c0_30, %c0_31] : memref<1x1x8xf32, #tpu.memory_space<vmem>>, vector<1x1x8xf32>
    %29 = vector.shape_cast %28 : vector<1x1x8xf32> to vector<1x8xf32>
    %30 = vector.broadcast %29 : vector<1x8xf32> to vector<8x8xf32>
    %31 = arith.addf %27, %30 : vector<8x8xf32>
    %cst_32 = arith.constant 0.353553385 : f32
    %32 = vector.broadcast %cst_32 : f32 to vector<8x8xf32>
    %33 = arith.mulf %21, %32 : vector<8x8xf32>
    %cst_33 = arith.constant dense<0.000000e+00> : vector<8x8xf32>
    %34 = tpu.matmul %33, %26, %cst_33 {dimension_numbers = #tpu.dot_dimension_numbers<[1], [1], [0], [0], [0, 0, 1, 0], [], []>} : vector<8x8xf32>, vector<8x8xf32>, vector<8x8xf32> -> vector<8x8xf32>
    %cst_34 = arith.constant dense<0xFF800000> : vector<8xf32>
    %35 = vector.multi_reduction <maximumf>, %34, %cst_34 [1] : vector<8x8xf32> to vector<8xf32>
    %36 = vector.shape_cast %35 : vector<8xf32> to vector<8x1xf32>
    %37 = vector.broadcast %36 : vector<8x1xf32> to vector<8x8xf32>
    %38 = arith.subf %34, %37 : vector<8x8xf32>
    %39 = math.exp %38 : vector<8x8xf32>
    %cst_35 = arith.constant dense<0.000000e+00> : vector<8xf32>
    %40 = vector.multi_reduction <add>, %39, %cst_35 [1] : vector<8x8xf32> to vector<8xf32>
    %41 = vector.shape_cast %40 : vector<8xf32> to vector<8x1xf32>
    %42 = tpu.reciprocal %41 {approx = true} : vector<8x1xf32> -> vector<8x1xf32>
    %43 = vector.broadcast %42 : vector<8x1xf32> to vector<8x8xf32>
    %44 = arith.mulf %39, %43 : vector<8x8xf32>
    %cst_36 = arith.constant dense<0.000000e+00> : vector<8x8xf32>
    %45 = tpu.matmul %44, %31, %cst_36 {dimension_numbers = #tpu.dot_dimension_numbers<[1], [0], [0], [1], [0, 0, 1, 1], [], []>} : vector<8x8xf32>, vector<8x8xf32>, vector<8x8xf32> -> vector<8x8xf32>
    %c0_37 = arith.constant 0 : index
    %c0_38 = arith.constant 0 : index
    %46 = vector.load %arg16[%c0_37, %c0_38] : memref<8x32xf32, #tpu.memory_space<vmem>>, vector<8x32xf32>
    %cst_39 = arith.constant dense<0.000000e+00> : vector<8x32xf32>
    %47 = tpu.matmul %45, %16, %cst_39 {dimension_numbers = #tpu.dot_dimension_numbers<[1], [0], [0], [1], [0, 0, 1, 1], [], []>} : vector<8x8xf32>, vector<8x32xf32>, vector<8x32xf32> -> vector<8x32xf32>
    %48 = arith.addf %46, %47 : vector<8x32xf32>
    %c0_40 = arith.constant 0 : index
    %c0_41 = arith.constant 0 : index
    %49 = vector.load %arg16[%c0_40, %c0_41] : memref<8x32xf32, #tpu.memory_space<vmem>>, vector<8x32xf32>
    tpu.vector_store %arg16[%c0_40, %c0_41], %48 {strides = array<i32>} : memref<8x32xf32, #tpu.memory_space<vmem>>, vector<8x32xf32>,
    %c0_42 = arith.constant 0 : index
    %c0_43 = arith.constant 0 : index
    %50 = vector.load %arg17[%c0_42, %c0_43] : memref<8x8xf32, #tpu.memory_space<vmem>>, vector<8x8xf32>
    %51 = arith.addf %50, %44 : vector<8x8xf32>
    %c0_44 = arith.constant 0 : index
    %c0_45 = arith.constant 0 : index
    %52 = vector.load %arg17[%c0_44, %c0_45] : memref<8x8xf32, #tpu.memory_space<vmem>>, vector<8x8xf32>
    tpu.vector_store %arg17[%c0_44, %c0_45], %51 {strides = array<i32>} : memref<8x8xf32, #tpu.memory_space<vmem>>, vector<8x8xf32>,
    %c3_i32 = arith.constant 3 : i32
    %53 = arith.cmpi eq, %arg2, %c3_i32 : i32
    %54 = arith.extui %53 : i1 to i32
    %c0_i32_46 = arith.constant 0 : i32
    %55 = arith.cmpi ne, %54, %c0_i32_46 : i32
    scf.if %55 {
      %c0_47 = arith.constant 0 : index
      %c0_48 = arith.constant 0 : index
      %56 = vector.load %arg16[%c0_47, %c0_48] : memref<8x32xf32, #tpu.memory_space<vmem>>, vector<8x32xf32>
      %c0_49 = arith.constant 0 : index
      %c0_50 = arith.constant 0 : index
      %57 = vector.load %arg13[%c0_49, %c0_50] : memref<1x32xf32, #tpu.memory_space<vmem>>, vector<1x32xf32>
      %58 = vector.broadcast %57 : vector<1x32xf32> to vector<8x32xf32>
      %59 = arith.addf %56, %58 : vector<8x32xf32>
      %c0_51 = arith.constant 0 : index
      %c0_52 = arith.constant 0 : index
      %c0_53 = arith.constant 0 : index
      %60 = vector.load %arg14[%c0_51, %c0_52, %c0_53] : memref<1x8x32xf32, #tpu.memory_space<vmem>>, vector<1x8x32xf32>
      %61 = vector.shape_cast %60 : vector<1x8x32xf32> to vector<8x32xf32>
      %62 = vector.shape_cast %59 : vector<8x32xf32> to vector<1x8x32xf32>
      tpu.vector_store %arg14[%c0_51, %c0_52, %c0_53], %62 {strides = array<i32>} : memref<1x8x32xf32, #tpu.memory_space<vmem>>, vector<1x8x32xf32>,
      %c0_54 = arith.constant 0 : index
      %c0_55 = arith.constant 0 : index
      %63 = vector.load %arg17[%c0_54, %c0_55] : memref<8x8xf32, #tpu.memory_space<vmem>>, vector<8x8xf32>
      %cst_56 = arith.constant 2.500000e-01 : f32
      %64 = vector.broadcast %cst_56 : f32 to vector<8x8xf32>
      %65 = arith.mulf %63, %64 : vector<8x8xf32>
      %c0_57 = arith.constant 0 : index
      %c0_58 = arith.constant 0 : index
      %c0_59 = arith.constant 0 : index
      %66 = vector.load %arg15[%c0_57, %c0_58, %c0_59] : memref<1x8x8xf32, #tpu.memory_space<vmem>>, vector<1x8x8xf32>
      %67 = vector.shape_cast %66 : vector<1x8x8xf32> to vector<8x8xf32>
      %68 = vector.shape_cast %65 : vector<8x8xf32> to vector<1x8x8xf32>
      tpu.vector_store %arg15[%c0_57, %c0_58, %c0_59], %68 {strides = array<i32>} : memref<1x8x8xf32, #tpu.memory_space<vmem>>, vector<1x8x8xf32>,
    } else {
    }
    return
  }
  func.func @transform_0(%arg0: i32, %arg1: i32, %arg2: i32) -> (i32, i32, i32) {
    %c0_i32 = arith.constant 0 : i32
    %c0_i32_0 = arith.constant 0 : i32
    return %arg0, %arg1, %c0_i32 : i32, i32, i32
  }
  func.func @transform_1(%arg0: i32, %arg1: i32, %arg2: i32) -> (i32, i32, i32) {
    %c0_i32 = arith.constant 0 : i32
    %c0_i32_0 = arith.constant 0 : i32
    %c0_i32_1 = arith.constant 0 : i32
    return %arg0, %c0_i32, %c0_i32_0 : i32, i32, i32
  }
  func.func @transform_2(%arg0: i32, %arg1: i32, %arg2: i32) -> (i32, i32, i32) {
    %c0_i32 = arith.constant 0 : i32
    %c0_i32_0 = arith.constant 0 : i32
    %c0_i32_1 = arith.constant 0 : i32
    return %arg0, %c0_i32, %c0_i32_0 : i32, i32, i32
  }
  func.func @transform_3(%arg0: i32, %arg1: i32, %arg2: i32) -> (i32, i32, i32) {
    %c0_i32 = arith.constant 0 : i32
    %c0_i32_0 = arith.constant 0 : i32
    %c0_i32_1 = arith.constant 0 : i32
    return %arg2, %c0_i32, %c0_i32_0 : i32, i32, i32
  }
  func.func @transform_4(%arg0: i32, %arg1: i32, %arg2: i32) -> (i32, i32, i32) {
    %c0_i32 = arith.constant 0 : i32
    %c0_i32_0 = arith.constant 0 : i32
    %c0_i32_1 = arith.constant 0 : i32
    return %arg2, %c0_i32, %c0_i32_0 : i32, i32, i32
  }
  func.func @transform_5(%arg0: i32, %arg1: i32, %arg2: i32) -> (i32, i32, i32) {
    %c0_i32 = arith.constant 0 : i32
    %c0_i32_0 = arith.constant 0 : i32
    %c0_i32_1 = arith.constant 0 : i32
    return %arg2, %c0_i32, %c0_i32_0 : i32, i32, i32
  }
  func.func @transform_6(%arg0: i32, %arg1: i32, %arg2: i32) -> (i32, i32, i32) {
    %c0_i32 = arith.constant 0 : i32
    %c0_i32_0 = arith.constant 0 : i32
    %c0_i32_1 = arith.constant 0 : i32
    return %arg2, %c0_i32, %c0_i32_0 : i32, i32, i32
  }
  func.func @transform_7(%arg0: i32, %arg1: i32, %arg2: i32) -> (i32, i32, i32) {
    %c0_i32 = arith.constant 0 : i32
    %c0_i32_0 = arith.constant 0 : i32
    %c0_i32_1 = arith.constant 0 : i32
    return %arg2, %c0_i32, %c0_i32_0 : i32, i32, i32
  }
  func.func @transform_8(%arg0: i32, %arg1: i32, %arg2: i32) -> (i32, i32, i32) {
    %c0_i32 = arith.constant 0 : i32
    %c0_i32_0 = arith.constant 0 : i32
    %c0_i32_1 = arith.constant 0 : i32
    return %arg2, %c0_i32, %c0_i32_0 : i32, i32, i32
  }
  func.func @transform_9(%arg0: i32, %arg1: i32, %arg2: i32) -> (i32, i32, i32) {
    %c0_i32 = arith.constant 0 : i32
    %c0_i32_0 = arith.constant 0 : i32
    %c0_i32_1 = arith.constant 0 : i32
    return %arg2, %c0_i32, %c0_i32_0 : i32, i32, i32
  }
  func.func @transform_10(%arg0: i32, %arg1: i32, %arg2: i32) -> (i32, i32) {
    %c0_i32 = arith.constant 0 : i32
    %c0_i32_0 = arith.constant 0 : i32
    %c0_i32_1 = arith.constant 0 : i32
    return %c0_i32, %c0_i32_0 : i32, i32
  }
  func.func @transform_11(%arg0: i32, %arg1: i32, %arg2: i32) -> (i32, i32, i32) {
    %c0_i32 = arith.constant 0 : i32
    %c0_i32_0 = arith.constant 0 : i32
    return %arg0, %arg1, %c0_i32 : i32, i32, i32
  }
  func.func @transform_12(%arg0: i32, %arg1: i32, %arg2: i32) -> (i32, i32, i32) {
    %c0_i32 = arith.constant 0 : i32
    %c0_i32_0 = arith.constant 0 : i32
    return %arg0, %arg1, %c0_i32 : i32, i32, i32
  }
}

</mosaic_0001>

<bundles_post_ra>
// kernel: tpu_custom_call.1
= control target key start
LH: loop header
LB: loop body
LE: loop exit
PB: predicated region body
PF: predicated region fallthrough
CT: control target
= control target key end

     0   :  { %s2046_s0 = inlined_call_operand.vmem [shape: f32[2,8,32], index: 0, kind: input, shape index: {}]   ;;  %s2047_s1 = inlined_call_operand.vmem [shape: f32[2,8,32], index: 1, kind: input, shape index: {}]   ;;  %s2048_s2 = inlined_call_operand.vmem [shape: f32[2,8,32], index: 2, kind: input, shape index: {}]   ;;  %s2049_s3 = inlined_call_operand.vmem [shape: f32[4,32,8], index: 3, kind: input, shape index: {}]   ;;  %s2050_s4 = inlined_call_operand.vmem [shape: f32[4,32,8], index: 4, kind: input, shape index: {}]   ;;  %s2051_s5 = inlined_call_operand.vmem [shape: f32[4,32,8], index: 5, kind: input, shape index: {}]   ;;  %s2052_s6 = inlined_call_operand.vmem [shape: f32[4,1,8], index: 6, kind: input, shape index: {}]   ;;  %s2053_s7 = inlined_call_operand.vmem [shape: f32[4,1,8], index: 7, kind: input, shape index: {}]   ;;  %s2054_s8 = inlined_call_operand.vmem [shape: f32[4,1,8], index: 8, kind: input, shape index: {}]   ;;  %s2055_s9 = inlined_call_operand.vmem [shape: f32[4,8,32], index: 9, kind: input, shape index: {}]   ;;  %s2056_s10 = inlined_call_operand.vmem [shape: f32[1,32], index: 10, kind: input, shape index: {}]   ;;  %s2057_s11 = inlined_call_operand.hbm [shape: f32[2,8,32], index: 11, kind: output, shape index: {0}]   ;;  %s2058_s12 = inlined_call_operand.hbm [shape: f32[2,8,8], index: 12, kind: output, shape index: {1}]  }
   0x1   :  { %2076 = sst [smem:[#allocation23_spill]] %s2049_s3 }
   0x2   :  { %2077 = sst [smem:[#allocation24_spill]] %s2050_s4 }
   0x3   :  { %2078 = sst [smem:[#allocation25_spill]] %s2056_s10 }
   0x4   :  { %2079 = sst [smem:[#allocation26_spill]] %s2057_s11 }
   0x5   :  { %2080 = sst [smem:[#allocation27_spill]] %s2058_s12 }
   0x6   :  { %18 = vsyncpa [#allocation5], 0 }
   0x7   :  { %20 = vsyncpa [#allocation5 + $0x1], 0 }
   0x8   :  { %21 = vsyncpa [#allocation7], 0 }
   0x9   :  { %23 = vsyncpa [#allocation7 + $0x1], 0  ;;  %s1758_s21 = smov 0   ;;  %s1760_s22 = smov 0  }
   0xa   :  { %s1762_s23 = smov 0   ;;  %s1764_s24 = smov 0  }
   0xb   :  { %s1766_s25 = smov 0   ;;  %s1768_s26 = smov 0  }
   0xc   :  { %s1770_s27 = smov 0   ;;  %s1772_s28 = smov 0  }
   0xd LB: > { %2081 = sst [smem:[#allocation10_spill]] %s1658_s21  ;;  %s1373_s29 = sadd.s32 4294967295, %s1686_s28   ;;  %s1686_s28 = sphi %s1772_s28, %s29_s28   ;;  %s1682_s27 = sphi %s1770_s27, %s2118_s27   ;;  %s1678_s26 = sphi %s1768_s26, %s2117_s26   ;;  %s1674_s25 = sphi %s1766_s25, %s2116_s25   ;;  %s1670_s24 = sphi %s1764_s24, %s2115_s24   ;;  %s1666_s23 = sphi %s1762_s23, %s2114_s23   ;;  %s1662_s22 = sphi %s1760_s22, %s2113_s22   ;;  %s1658_s21 = sphi %s1758_s21, %s2112_s21  }
   0xe   : > { %2082 = sst [smem:[#allocation11_spill]] %s1662_s22  ;;  %s1374_s30 = sadd.s32 4294967294, %s1686_s28  }
   0xf   : > { %2083 = sst [smem:[#allocation12_spill]] %s1666_s23  ;;  %s41_s13 = sadd.s32 1, %s1678_s26 }
  0x10   : > { %2084 = sst [smem:[#allocation13_spill]] %s1674_s25  ;;  %p42_p0 = scmp.ge.s32.totalorder %s41_s13, 4 }
  0x11   : > { %2085 = sst [smem:[#allocation14_spill]] %s1678_s26  ;;  %s48_s14 = sadd.s32 1, %s1682_s27 }
  0x12   : > { %2086 = sst [smem:[#allocation15_spill]] %s1682_s27  ;;  %p350_p1 = scmp.ne.s32.totalorder %s1666_s23, %s1662_s22 }
  0x13   : > { %2087 = sst [smem:[#allocation16_spill]] %s1686_s28  ;;  %p351_p2 = scmp.eq.s32.totalorder %s1373_s29, 7 }
  0x14   : > { %s2120_s13 = smov (%p42_p0, %s41_s13), 0  ;;  %s2122_s14 = smov (!%p42_p0, %s48_s14), %s1682_s27 }
  0x15   : > { %2088 = sst [smem:[#allocation17_spill]] %s2120_s13  ;;  %p1807_p3 = por %p351_p2, %p350_p1 }
  0x16   : > { %p356_p4 = scmp.ne.s32.totalorder %s1662_s22, %s1658_s21  ;;  %p50_p5 = scmp.ge.s32.totalorder %s2122_s14, 2 }
  0x17   : > { %s2089_s15 = scalar_select %p1807_p3, 1, 0 }
  0x18   : > { %p357_p6 = scmp.eq.s32.totalorder %s1374_s30, 7  ;;  %p1377_p7 = scmp.ge.s32.totalorder %s1686_s28, 1 }
  0x19   : > { %2090 = sst [smem:[#allocation18_spill]] %s2089_s15  ;;  %p479_p8 = scmp.lt.s32.totalorder %s1686_s28, 9 }
  0x1a   : > { %s2124_s14 = smov (%p50_p5, %s2122_s14), 0  ;;  %p1817_p9 = por %p357_p6, %p356_p4 }
  0x1b   : > { %2091 = sst [smem:[#allocation19_spill]] %s2124_s14  ;;  %p480_p10 = pnand %p1377_p7, %p479_p8 }
  0x1c   : > { %s2092_s16 = scalar_select %p1817_p9, 1, 0 }
  0x1d   : > { %s335_s17 = ssub.s32 %s1682_s27, %s2124_s14  ;;  %s340_s18 = sadd.s32 1, %s1666_s23 }
  0x1e   : > { %2093 = sst [smem:[#allocation20_spill]] %s2092_s16  ;;  %p338_p11 = scmp.eq.s32.totalorder %s335_s17, 0 }
  0x1f   : > { %483 = sbr.rel (%p480_p10) target bundleno = 1216 (0x4c0), region = 64 }
  0x20   : > { %s1825_s19 = scalar_select %p338_p11, %s1666_s23, %s340_s18  }
  0x22   : > { %2094 = sst [smem:[#allocation21_spill]] %s1825_s19 }
  0x24   : > { %s1828_s20 = sand.u32 1, %s1662_s22   ;;  %p564_p12 = scmp.lt.s32.totalorder %s1674_s25, 1 }
  0x25   : > { %2095 = sst [smem:[#allocation22_spill]] %s1828_s20  ;;  %s1378_s29 = sshll.u32 %s1828_s20, 3 }
  0x26   : > { %p579_p13 = scmp.lt.s32.totalorder %s1670_s24, 3  ;;  %s2096_s3 = sld [smem:[#allocation23_spill]] }
  0x27   : > { %s565_s30 = scalar_select %p564_p12, %s1674_s25, 1 }
  0x28   : > { %s1835_s13 = scalar_select %p579_p13, %s1670_s24, 3 }
  0x29   : > { %s1837_s17 = sshll.u32 %s565_s30, 3  ;;  %s2097_s4 = sld [smem:[#allocation24_spill]] }
  0x2a   : > { %s1409_s28 = sshll.u32 %s1835_s13, 5  ;;  %s596_s22 = scalar_lea.vmem %s2052_s6, %s1835_s13 }
  0x2b   : > { %s1865_s26 = scalar_lea.vmem %s2051_s5, %s1409_s28  ;;  %s599_s11 = scalar_lea.vmem %s2053_s7, %s1835_s13 }
  0x2c   : > { %s1855_s30 = scalar_lea.vmem %s2096_s3, %s1409_s28  ;;  %s602_s25 = scalar_lea.vmem %s2054_s8, %s1835_s13 }
  0x2d   : > { %s1389_s15 = sshll.u32 %s1835_s13, 3  ;;  %s1885_s27 = scalar_lea.vmem [#allocation4], %s1378_s29 }
  0x2e   : > { %s1883_s10 = scalar_lea.vmem %s2055_s9, %s1389_s15  ;;  %p1390_p0 = scmp.ne.s32.totalorder %s1670_s24, 0 }
  0x2f   : > { %s1860_s14 = scalar_lea.vmem %s2097_s4, %s1409_s28  ;;  %s1887_s28 = scalar_lea.vmem [#allocation6], %s1378_s29 }
  0x30   : > { %610 = sbr.rel (%p1390_p0) target bundleno = 56 (0x38), region = 68 }
  0x35   : > { %vm611_vm0 = vcmask 261120   ;;  %vm613_vm1 = vcmask 64512   ;;  %v1688_v0 = vmov 0.0  }
  0x36   : > { %612 = vst.msk [vmem:[#allocation2] sm:$0xff] %vm611_vm0, %v1688_v0 }
  0x37   : > { %614 = vst.msk [vmem:[#allocation3] sm:$0xff] %vm613_vm1, %v1688_v0 }
  0x38 PF: > { %v621_v1 = vld [vmem:[%s1855_s30 + $0x18] sm:$0xff]  ;;  %v1689_v3 = vmov 0.0   ;;  %v620_v4 = vld [vmem:[%s1855_s30 + $0x10] sm:$0xff]  ;;  %v619_v6 = vld [vmem:[%s1855_s30 + $0x8] sm:$0xff]  ;;  %s2098_s21 = scalar_lea.vmem %s2046_s0, %s1837_s17  ;;  %vm638_vm2 = vcmask 261120   ;;  %s2099_s18 = scalar_lea.vmem %s2047_s1, %s1837_s17  ;;  %vm1690_vm3 = vmmov 0  }
  0x39   : > { %v625_v2 = vld [vmem:[%s1860_s14 + $0x18] sm:$0xff]  ;;  %1433 = vmatprep.subr.mxu0 %v1689_v3  ;;  %1444 = vmatprep.subr.mxu1 %v1689_v3  ;;  %v624_v5 = vld [vmem:[%s1860_s14 + $0x10] sm:$0xff]  ;;  %v623_v7 = vld [vmem:[%s1860_s14 + $0x8] sm:$0xff]  ;;  %vm873_vm4 = vcmask 64512   ;;  %s2100_s12 = scalar_lea.vmem %s2048_s2, %s1837_s17  ;;  %p1401_p1 = scmp.ne.s32.totalorder %s1670_s24, 3 }
  0x3a   : > { %1434 = vmatpush3.msra.mxu0 %v621_v1  ;;  %1445 = vmatpush3.msra.mxu1 %v625_v2  ;;  %v618_v8 = vld [vmem:[%s1855_s30] sm:$0xff]  ;;  %v629_v21 = vld [vmem:[%s1865_s26 + $0x18] sm:$0xff]  ;;  %v628_v22 = vld [vmem:[%s1865_s26 + $0x10] sm:$0xff]  ;;  %s2101_s13 = sld [smem:[#allocation25_spill]] (!%p1401_p1) }
  0x3b   : > { %1435 = vmatprep.subr.mxu0 %v1689_v3  ;;  %1446 = vmatprep.subr.mxu1 %v1689_v3  ;;  %v622_v9 = vld [vmem:[%s1860_s14] sm:$0xff]  ;;  %v627_v23 = vld [vmem:[%s1865_s26 + $0x8] sm:$0xff] }
  0x3c   : > { %1436 = vmatpush3.msra.mxu0 %v620_v4  ;;  %1447 = vmatpush3.msra.mxu1 %v624_v5  ;;  %v615_v10 = vld [vmem:[%s2098_s21] sm:$0xff] }
  0x3d   : > { %1437 = vmatprep.subr.mxu0 %v1689_v3  ;;  %1448 = vmatprep.subr.mxu1 %v1689_v3  ;;  %v616_v11 = vld [vmem:[%s2099_s18] sm:$0xff] }
  0x3e   : > { %1438 = vmatpush3.msra.mxu0 %v619_v6  ;;  %1449 = vmatpush3.msra.mxu1 %v623_v7  ;;  %v1391_v12 = vld [vmem:[%s596_s22] ss:$0 sm:$0xff]  ;;  %v1110_v41 = vld [vmem:[#allocation3] sm:$0xff] }
  0x3f   : > { %1439 = vmatprep.subr.mxu0 %v1689_v3  ;;  %1450 = vmatprep.subr.mxu1 %v1689_v3  ;;  %v1393_v13 = vld [vmem:[%s599_s11] ss:$0 sm:$0xff] }
  0x40   : > { %1440 = vmatpush3.msra.mxu0 %v618_v8  ;;  %1441 = vmatprep.mubr.msk.f32.mxu0 %vm1690_vm3, %v1689_v3  ;;  %v626_v24 = vld [vmem:[%s1865_s26] sm:$0xff] }
  0x41   : > { %1451 = vmatpush3.msra.mxu1 %v622_v9  ;;  %1452 = vmatprep.mubr.msk.f32.mxu1 %vm1690_vm3, %v1689_v3  ;;  %v617_v25 = vld [vmem:[%s2100_s12] sm:$0xff] }
  0x42   : > { %1442 = vmatmul.mubr.msk.f32.vlgmr.msra.gmra.mxu0 %vm638_vm2, %v615_v10  ;;  %1453 = vmatmul.mubr.msk.f32.vlgmr.msra.gmra.mxu1 %vm638_vm2, %v616_v11  ;;  %v1395_v34 = vld [vmem:[%s602_s25] ss:$0 sm:$0xff] }
  0x43   : > { %1466 = vmatprep.subr.mxu1 %v1689_v3  ;;  %1468 = vmatprep.mubr.msk.f32.mxu1 %vm1690_vm3, %v1689_v3  ;;  %v630_v38 = vld [vmem:[%s1883_s10] sm:$0xff] }
  0x44   : > { %1455 = vmatprep.subr.mxu0 %v1689_v3  ;;  %1463 = vmatprep.mubr.msk.f32.mxu0 %vm1690_vm3, %v1689_v3  ;;  %v1034_v46 = vld [vmem:[#allocation2] sm:$0xff] }
  0x45   : > { %1456 = vmatpush3.msra.mxu0 %v629_v21 }
  0x46   : > { %1457 = vmatprep.subr.mxu0 %v1689_v3 }
  0x47   : > { %1458 = vmatpush3.msra.mxu0 %v628_v22 }
  0x48   : > { %1459 = vmatprep.subr.mxu0 %v1689_v3 }
  0x49   : > { %1460 = vmatpush3.msra.mxu0 %v627_v23 }
  0x4a   : > { %1461 = vmatprep.subr.mxu0 %v1689_v3 }
  0x4b   : > { %1462 = vmatpush3.msra.mxu0 %v626_v24 }
  0x4c   : > { %1464 = vmatmul.mubr.msk.f32.vlgmr.msra.gmra.mxu0 %vm638_vm2, %v617_v25  ;;  %1476 = vmatprep.subr.mxu0 %v1689_v3 }
  0x4d   : > { %1478 = vmatprep.mubr.msk.f32.mxu0 %vm1690_vm3, %v1689_v3  ;;  %1477 = vmatpush3.msra.mxu0 %v630_v38 }
 0x102   : > { %v708_v14 = vpop.f32.mrf.mxu0  ;;  %v788_v15 = vpop.f32.mrf.mxu1 }
 0x103   : > { %v709_v16 = vadd.f32 %v1391_v12, %v708_v14  ;;  %v789_v17 = vadd.f32 %v1393_v13, %v788_v15 }
 0x104   : > { %v1443_v18 = vpop.f32.mrf.mxu0  ;;  %v1454_v19 = vpop.f32.mrf.mxu1 }
 0x105   : > { %v872_v20 = vmul.f32 0.35355338, %v709_v16  ;;  %1467 = vmatpush3.xpose.msk.msra.mxu1 %vm873_vm4, %v789_v17 }
 0x106   : > { %1471 = vmatprep.subr.mxu1 %v1689_v3 }
 0x108   : > { %1469 = vmatmul.mubr.msk.f32.vlgmr.msra.gmra.mxu1 %vm873_vm4, %v872_v20 }
 0x109   : > { %1473 = vmatprep.mubr.msk.f32.mxu1 %vm1690_vm3, %v1689_v3 }
 0x10c   : > { %v868_v35 = vpop.f32.mrf.mxu0 }
 0x10d   : > { %v869_v36 = vadd.f32 %v1395_v34, %v868_v35 }
 0x10e   : > { %v1465_v37 = vpop.f32.mrf.mxu0 }
 0x10f   : > { %1472 = vmatpush3.msra.mxu1 %v869_v36 }
 0x1c8   : > { %v946_v26 = vpop.f32.mrf.mxu1 }
 0x1c9   : > { %v950_v27 = vsel %vm873_vm4, %v946_v26, -inf }
 0x1ca   : > { %951 = vmax.xlane.f32.xlu0 %v950_v27  ;;  %v1470_v28 = vpop.f32.mrf.mxu1 }
 0x253   : > { %v952_v29 = vpop.xlane.xlu0 %951 }
 0x254   : > { %v953_v30 = vsub.f32 %v946_v26, %v952_v29 }
 0x256   : > { %v954_v31 = vmul.f32 1.442695, %v953_v30 }
 0x258   : > { %1560 = vpow2.f32 %v954_v31 }
 0x265   : > { %v1561_v32 = vpop.eup %1560 }
 0x266   : > { %v956_v33 = vsel %vm873_vm4, %v1561_v32, 0.0 }
 0x267   : > { %957 = vadd.xlane.f32.xlu0 %v956_v33 }
 0x2f0   : > { %v958_v39 = vpop.xlane.xlu0 %957 }
 0x2f1   : > { %1562 = vrcp.f32 %v958_v39 }
 0x2fe   : > { %v1563_v40 = vpop.eup %1562 }
 0x2ff   : > { %v960_v42 = vmul.f32 %v1563_v40, %v1561_v32 }
 0x301   : > { %1474 = vmatmul.mubr.msk.f32.vlgmr.msra.gmra.mxu1 %vm873_vm4, %v960_v42  ;;  %v1111_v43 = vadd.f32 %v1110_v41, %v960_v42 }
 0x303   : > { %1112 = vst.msk [vmem:[#allocation3] sm:$0xff] %vm873_vm4, %v1111_v43 }
 0x3c1   : > { %v1030_v44 = vpop.f32.mrf.mxu1 }
 0x3c2   : > { %1479 = vmatmul.mubr.msk.f32.vlgmr.msra.gmra.mxu0 %vm873_vm4, %v1030_v44 }
 0x3c3   : > { %v1475_v45 = vpop.f32.mrf.mxu1 }
 0x481   : > { %1116 = sbr.rel (%p1401_p1) target bundleno = 1168 (0x490), region = 72 }
 0x482   : > { %v1104_v47 = vpop.f32.mrf.mxu0 }
 0x483   : > { %v1108_v48 = vadd.f32 %v1104_v47, %v1034_v46 }
 0x484   : > { %v1480_v49 = vpop.f32.mrf.mxu0 }
 0x485   : > { %1109 = vst.msk [vmem:[#allocation2] sm:$0xff] %vm638_vm2, %v1108_v48 }
 0x486   : > { %v1402_v51 = vld [vmem:[%s2101_s13] ss:$0 sm:$0xff]  ;;  %v1127_v52 = vld [vmem:[#allocation3] sm:$0xff] }
 0x487   : > { %v1128_v54 = vmul.f32 0.25, %v1127_v52 }
 0x489   : > { %1129 = vst.msk [vmem:[%s1887_s28] sm:$0xff] %vm873_vm4, %v1128_v54 }
 0x48c   : > { %v1117_v50 = vld [vmem:[#allocation2] sm:$0xff] }
 0x48d   : > { %v1125_v53 = vadd.f32 %v1402_v51, %v1117_v50 }
 0x48f   : > { %1126 = vst.msk [vmem:[%s1885_s27] sm:$0xff] %vm638_vm2, %v1125_v53 }
 0x490 PF: > { %s2102_s15 = sld [smem:[#allocation13_spill]]  ;;  %s1150_s30 = sshll.u32 %s1885_s27, 4  ;;  %s1151_s30 = int_to_ptr.vmem [resolvable:$true] %s1150_s30 }
 0x491   : > { %s2103_s24 = sld [smem:[#allocation22_spill]]  ;;  %s1564_s19 = scalar_lea.vmem %s1151_s30, 128 }
 0x492   : > { %s2105_s23 = sld [smem:[#allocation26_spill]]  ;;  %p1565_p2 = scmp.ne.s32.totalorder %s1151_s30, %s1564_s19 }
 0x493   : > { %s1691_s16 = smov [#allocation4]  }
 0x494   : > { %p1566_p4 = pnand %p1565_p2, %p1807_p3  ;;  %s1568_s22 = sshll.u32 %s1691_s16, 4  ;;  %s1569_s22 = int_to_ptr.vmem [resolvable:$false] %s1568_s22 }
 0x495   : > { %s1570_s11 = scalar_lea.vmem %s1569_s22, 256  ;;  %p1571_p6 = scmp.lt.s32.totalorder %s1151_s30, %s1569_s22 }
 0x496   : > { %s1405_s3 = sshll.u32 %s2102_s15, 7  ;;  %p1567_p5 = pneg %p1566_p4 }
 0x497   : > { %s1131_s14 = scalar_lea.sflag [#allocation5], %s2103_s24  ;;  %p1572_p7 = scmp.lt.s32.totalorder %s1570_s11, %s1564_s19 }
 0x498   : > { %s2106_s29 = smov %s2105_s23  ;;  %s1148_s18 = scalar_lea.hbm %s2105_s23, %s1405_s3 }
 0x499   : > { %p1573_p8 = por %p1572_p7, %p1571_p6 }
 0x49b   : > { %p1574_p10 = pnand %p1573_p8, %p1567_p5 }
 0x49d   : > { %1577 = shalt.err (!%p1574_p10)
}
 0x49e   : > { %s1578_s12 = scalar_lea.hbm %s1148_s18, 128  ;;  %s1582_s26 = scalar_lea.hbm %s2106_s29, 256 }
 0x49f   : > { %p1579_p11 = scmp.ne.s32.totalorder %s1148_s18, %s1578_s12  ;;  %p1583_p0 = scmp.lt.s32.totalorder %s1148_s18, %s2106_s29 }
 0x4a0   : > { %p1584_p1 = scmp.lt.s32.totalorder %s1582_s26, %s1578_s12 }
 0x4a1   : > { %p1580_p12 = pnand %p1579_p11, %p1807_p3 }
 0x4a2   : > { %p1585_p2 = por %p1584_p1, %p1583_p0 }
 0x4a3   : > { %p1581_p13 = pneg %p1580_p12 }
 0x4a5   : > { %p1586_p4 = pnand %p1585_p2, %p1581_p13 }
 0x4a7   : > { %1589 = shalt.err (!%p1586_p4)
}
 0x4a8   : > { %1481 = dma.vmem_to_hbm [thread:$0]  (%p1807_p3), %s1151_s30, 128, %s1148_s18, %s1131_s14  }
 0x4a9   : > { %s2107_s21 = sld [smem:[#allocation27_spill]]  ;;  %s1164_s16 = sshll.u32 %s1887_s28, 4  ;;  %s1165_s16 = int_to_ptr.vmem [resolvable:$true] %s1164_s16 }
 0x4aa   : > { %s1136_s22 = scalar_lea.sflag [#allocation7], %s2103_s24  ;;  %s1590_s11 = scalar_lea.vmem %s1165_s16, 128 }
 0x4ab   : > { %p1591_p5 = scmp.ne.s32.totalorder %s1165_s16, %s1590_s11  ;;  %s1692_s12 = smov [#allocation6]  }
 0x4ac   : > { %s1594_s27 = sshll.u32 %s1692_s12, 4  ;;  %s1595_s27 = int_to_ptr.vmem [resolvable:$false] %s1594_s27 }
 0x4ad   : > { %p1592_p6 = pnand %p1591_p5, %p1807_p3  ;;  %s1596_s17 = scalar_lea.vmem %s1595_s27, 256 }
 0x4ae   : > { %p1597_p8 = scmp.lt.s32.totalorder %s1165_s16, %s1595_s27  ;;  %p1598_p10 = scmp.lt.s32.totalorder %s1596_s17, %s1590_s11 }
 0x4af   : > { %s2108_s19 = smov %s2107_s21  ;;  %s1162_s23 = scalar_lea.hbm %s2107_s21, %s1405_s3 }
 0x4b0   : > { %p1593_p7 = pneg %p1592_p6  ;;  %p1599_p11 = por %p1598_p10, %p1597_p8 }
 0x4b2   : > { %p1600_p12 = pnand %p1599_p11, %p1593_p7 }
 0x4b4   : > { %1603 = shalt.err (!%p1600_p12)
}
 0x4b5   : > { %s1604_s15 = scalar_lea.hbm %s1162_s23, 128  ;;  %s1608_s3 = scalar_lea.hbm %s2108_s19, 256 }
 0x4b6   : > { %p1605_p13 = scmp.ne.s32.totalorder %s1162_s23, %s1604_s15  ;;  %p1609_p2 = scmp.lt.s32.totalorder %s1162_s23, %s2108_s19 }
 0x4b7   : > { %p1610_p4 = scmp.lt.s32.totalorder %s1608_s3, %s1604_s15 }
 0x4b8   : > { %p1606_p0 = pnand %p1605_p13, %p1807_p3 }
 0x4b9   : > { %p1611_p5 = por %p1610_p4, %p1609_p2 }
 0x4ba   : > { %p1607_p1 = pneg %p1606_p0 }
 0x4bc   : > { %p1612_p6 = pnand %p1611_p5, %p1607_p1 }
 0x4be   : > { %1615 = shalt.err (!%p1612_p6)
}
 0x4bf   : > { %1482 = dma.vmem_to_hbm [thread:$0]  (%p1807_p3), %s1165_s16, 128, %s1162_s23, %s1136_s22  }
 0x4c0 PF: > { %s2109_s14 = sld [smem:[#allocation16_spill]] }
 0x4c1   : > { %s2110_s26 = sld [smem:[#allocation10_spill]] }
 0x4c6   : > { %p1492_p7 = scmp.ge.s32.totalorder %s2109_s14, 2 }
 0x4c7   : > { %s1176_s25 = sand.u32 1, %s2110_s26  }
 0x4c8   : > { %p1486_p8 = pnand %p1492_p7, %p1817_p9  ;;  %s1177_s13 = scalar_lea.sflag [#allocation5], %s1176_s25 }
 0x4ca   : > { %p1487_p10 = pneg %p1486_p8 }
 0x4cc   : > { %1649 = dma.done.wait (%p1487_p10), %s1177_s13, 128  }
 0x4cd   : > { %1651 = vsyncadd (%p1487_p10), %s1177_s13, 4294967168  ;;  %s1186_s4 = scalar_lea.sflag [#allocation7], %s1176_s25 }
 0x4ce   : > { %1653 = dma.done.wait (%p1487_p10), %s1186_s4, 128  }
 0x4cf   : > { %1655 = vsyncadd (%p1487_p10), %s1186_s4, 4294967168  ;;  %s29_s28 = sadd.s32 1, %s2109_s14   ;;  %s2112_s21 = sld [smem:[#allocation11_spill]] }
 0x4d0   : > { %p26_p11 = scmp.ge.s32.totalorder %s29_s28, 10   ;;  %s2113_s22 = sld [smem:[#allocation12_spill]] }
 0x4d1   : > { %s2114_s23 = sld [smem:[#allocation21_spill]] }
 0x4d2   : > { %s2115_s24 = sld [smem:[#allocation14_spill]]  ;;  %28 = sbr.rel (!%p26_p11) target bundleno = 13 (0xd), region = 151 }
 0x4d3   : > { %s2116_s25 = sld [smem:[#allocation15_spill]] }
 0x4d4   : > { %s2117_s26 = sld [smem:[#allocation17_spill]] }
 0x4d5   : > { %s2118_s27 = sld [smem:[#allocation19_spill]] }
 0x4d7   :  { %1191 = vsyncpa [#allocation5], 1 }
 0x4d8   :  { %1193 = vsyncpa [#allocation5 + $0x1], 1 }
 0x4d9   :  { %1194 = vsyncpa [#allocation7], 1 }
 0x4da   :  { %1196 = vsyncpa [#allocation7 + $0x1], 1 }

</bundles_post_ra>
